<compile_context>
chip_gen: v6e
topology: v6e:2x2x1
jax: 0.10.0
libtpu: 0.0.40
codegen_flags: <defaults>
</compile_context>

<pallas_src>
import functools

import jax
import jax.numpy as jnp
from jax.experimental import pallas as pl
from jax.experimental.pallas import tpu as pltpu

EPS = 1e-3


def _bn_kernel(x_ref, g_ref, b_ref, o_ref,
               sum_ref, sq_ref, scale_ref, shift_ref, *, inv_m, eps):
    # x_ref / o_ref: (bn, C, HW)   (C on sublanes, HW on lanes)
    # g_ref / b_ref / scratch:     (C, 1)
    p = pl.program_id(0)           # 0 = stats pass, 1 = apply pass
    i = pl.program_id(1)           # batch-tile index
    n_tiles = pl.num_programs(1)

    @pl.when(p == 0)
    def _stats():
        @pl.when(i == 0)
        def _init():
            sum_ref[...] = jnp.zeros_like(sum_ref)
            sq_ref[...] = jnp.zeros_like(sq_ref)

        x = x_ref[...].astype(jnp.float32)                 # (bn, C, HW)
        # single sweep over x: lane reduction, then fold batch rows
        s = jnp.sum(x, axis=2, keepdims=True)              # (bn, C, 1)
        q = jnp.sum(x * x, axis=2, keepdims=True)          # (bn, C, 1)
        sum_ref[...] += jnp.sum(s, axis=0)                 # (C, 1)
        sq_ref[...] += jnp.sum(q, axis=0)                  # (C, 1)

        @pl.when(i == n_tiles - 1)
        def _finalize():
            mean = sum_ref[...] * inv_m                    # (C, 1)
            var = sq_ref[...] * inv_m - mean * mean        # biased variance
            var = jnp.maximum(var, 0.0)                    # clamp (E[x^2]-mean^2)
            inv = jax.lax.rsqrt(var + eps)
            scale = g_ref[...].astype(jnp.float32) * inv
            scale_ref[...] = scale
            shift_ref[...] = b_ref[...].astype(jnp.float32) - mean * scale

    @pl.when(p == 1)
    def _apply():
        x = x_ref[...].astype(jnp.float32)                 # (bn, C, HW)
        y = x * scale_ref[...][None, :, :] + shift_ref[...][None, :, :]
        o_ref[...] = y.astype(o_ref.dtype)


@jax.jit
def batchnorm2d(x_nchw, gamma, beta):
    """x_nchw: (N, C, H, W); gamma, beta: (C,). Training-mode batch norm."""
    n, c, h, w = x_nchw.shape
    hw = h * w
    x3d = x_nchw.reshape(n, c, hw)          # free reshape, no transpose
    g2d = gamma.reshape(c, 1)
    b2d = beta.reshape(c, 1)

    # Batch tile: largest exact divisor of N whose block stays <= ~4 MiB so the
    # double-buffered in + out blocks fit scoped VMEM on all generations
    # (incl. v7x: 64 MiB physical / 32 MiB scoped default).
    bytes_per_batch = c * hw * x_nchw.dtype.itemsize
    bn = max(1, min(n, (4 * 1024 * 1024) // max(1, bytes_per_batch)))
    while n % bn:
        bn -= 1
    n_tiles = n // bn
    inv_m = 1.0 / float(n * hw)

    kernel = functools.partial(_bn_kernel, inv_m=inv_m, eps=EPS)

    out3d = pl.pallas_call(
        kernel,
        out_shape=jax.ShapeDtypeStruct((n, c, hw), x_nchw.dtype),
        grid=(2, n_tiles),                                 # (pass, batch-tile)
        in_specs=[
            pl.BlockSpec((bn, c, hw), lambda p, i: (i, 0, 0)),
            pl.BlockSpec((c, 1), lambda p, i: (0, 0)),
            pl.BlockSpec((c, 1), lambda p, i: (0, 0)),
        ],
        # During the stats pass (p == 0) keep the output pinned to block 0 so no
        # uninitialized blocks are ever written back; the apply pass writes all.
        out_specs=pl.BlockSpec((bn, c, hw), lambda p, i: (i * p, 0, 0)),
        scratch_shapes=[
            pltpu.VMEM((c, 1), jnp.float32),   # per-channel sum
            pltpu.VMEM((c, 1), jnp.float32),   # per-channel sum of squares
            pltpu.VMEM((c, 1), jnp.float32),   # scale = gamma * rsqrt(var + eps)
            pltpu.VMEM((c, 1), jnp.float32),   # shift = beta - mean * scale
        ],
        compiler_params=pltpu.CompilerParams(
            dimension_semantics=("arbitrary", "arbitrary"),
            vmem_limit_bytes=32 * 1024 * 1024,
        ),
    )(x3d, g2d, b2d)

    return out3d.reshape(n, c, h, w)          # free reshape back to NCHW


if __name__ == "__main__":
    key = jax.random.PRNGKey(0)
    kx, kg, kb = jax.random.split(key, 3)

    # Shapes match the module: BatchNorm2d(128) over a (1, 128, 14, 14) input.
    N, C, H, W = 1, 128, 14, 14
    x = jax.random.normal(kx, (N, C, H, W), dtype=jnp.float32)

    # Deterministic affine parameters (PyTorch default is ones/zeros; perturb so
    # the affine path is actually exercised).
    gamma = 1.0 + 0.1 * jax.random.normal(kg, (C,), dtype=jnp.float32)
    beta = 0.1 * jax.random.normal(kb, (C,), dtype=jnp.float32)

    out = jax.block_until_ready(batchnorm2d(x, gamma, beta))

    # Reference check in plain JAX (training-mode batch norm semantics).
    mean = jnp.mean(x, axis=(0, 2, 3), keepdims=True)
    var = jnp.mean((x - mean) ** 2, axis=(0, 2, 3), keepdims=True)
    ref = (x - mean) / jnp.sqrt(var + EPS) * gamma.reshape(1, C, 1, 1) \
        + beta.reshape(1, C, 1, 1)

    assert out.shape == (N, C, H, W)
    assert jnp.max(jnp.abs(out - ref)) < 5e-4

    print("KERNEL_OK")
</pallas_src>

<mosaic_0001>
module attributes {stable_mosaic.version = 11 : i64} {
  func.func @_bn_kernel(%arg0: i32, %arg1: i32, %arg2: memref<1x128x196xf32, #tpu.memory_space<vmem>>, %arg3: memref<128x1xf32, #tpu.memory_space<vmem>>, %arg4: memref<128x1xf32, #tpu.memory_space<vmem>>, %arg5: memref<1x128x196xf32, #tpu.memory_space<vmem>>, %arg6: memref<128x1xf32, #tpu.memory_space<vmem>>, %arg7: memref<128x1xf32, #tpu.memory_space<vmem>>, %arg8: memref<128x1xf32, #tpu.memory_space<vmem>>, %arg9: memref<128x1xf32, #tpu.memory_space<vmem>>) attributes {dimension_semantics = [#tpu.dimension_semantics<arbitrary>, #tpu.dimension_semantics<arbitrary>], iteration_bounds = array<i64: 2, 1>, scalar_prefetch = 0 : i64, scratch_operands = 4 : i64, tpu.core_type = #tpu.core_type<tc>, window_params = [{transform_indices = @transform_0, window_bounds = array<i64: 1, 128, 196>}, {pipeline_mode = #tpu.pipeline_mode<synchronous>, transform_indices = @transform_1, window_bounds = array<i64: 128, 1>}, {pipeline_mode = #tpu.pipeline_mode<synchronous>, transform_indices = @transform_2, window_bounds = array<i64: 128, 1>}, {transform_indices = @transform_3, window_bounds = array<i64: 1, 128, 196>}]} {
    %c0_i32 = arith.constant 0 : i32
    %0 = arith.cmpi eq, %arg0, %c0_i32 : i32
    %1 = arith.extui %0 : i1 to i32
    %c0_i32_0 = arith.constant 0 : i32
    %2 = arith.cmpi ne, %1, %c0_i32_0 : i32
    scf.if %2 {
      %c0_i32_2 = arith.constant 0 : i32
      %6 = arith.cmpi eq, %arg1, %c0_i32_2 : i32
      %7 = arith.extui %6 : i1 to i32
      %c0_i32_3 = arith.constant 0 : i32
      %8 = arith.cmpi ne, %7, %c0_i32_3 : i32
      scf.if %8 {
        %cst_19 = arith.constant 0.000000e+00 : f32
        %26 = vector.broadcast %cst_19 : f32 to vector<128x1xf32>
        %c0_20 = arith.constant 0 : index
        %c0_21 = arith.constant 0 : index
        %27 = vector.load %arg6[%c0_20, %c0_21] : memref<128x1xf32, #tpu.memory_space<vmem>>, vector<128x1xf32>
        tpu.vector_store %arg6[%c0_20, %c0_21], %26 {strides = array<i32>} : memref<128x1xf32, #tpu.memory_space<vmem>>, vector<128x1xf32>,
        %cst_22 = arith.constant 0.000000e+00 : f32
        %28 = vector.broadcast %cst_22 : f32 to vector<128x1xf32>
        %c0_23 = arith.constant 0 : index
        %c0_24 = arith.constant 0 : index
        %29 = vector.load %arg7[%c0_23, %c0_24] : memref<128x1xf32, #tpu.memory_space<vmem>>, vector<128x1xf32>
        tpu.vector_store %arg7[%c0_23, %c0_24], %28 {strides = array<i32>} : memref<128x1xf32, #tpu.memory_space<vmem>>, vector<128x1xf32>,
      } else {
      }
      %c0 = arith.constant 0 : index
      %c0_4 = arith.constant 0 : index
      %c0_5 = arith.constant 0 : index
      %9 = vector.load %arg2[%c0, %c0_4, %c0_5] : memref<1x128x196xf32, #tpu.memory_space<vmem>>, vector<1x128x196xf32>
      %cst = arith.constant dense<0.000000e+00> : vector<1x128xf32>
      %10 = vector.multi_reduction <add>, %9, %cst [2] : vector<1x128x196xf32> to vector<1x128xf32>
      %11 = vector.shape_cast %10 : vector<1x128xf32> to vector<1x128x1xf32>
      %12 = arith.mulf %9, %9 : vector<1x128x196xf32>
      %cst_6 = arith.constant dense<0.000000e+00> : vector<1x128xf32>
      %13 = vector.multi_reduction <add>, %12, %cst_6 [2] : vector<1x128x196xf32> to vector<1x128xf32>
      %14 = vector.shape_cast %13 : vector<1x128xf32> to vector<1x128x1xf32>
      %c0_7 = arith.constant 0 : index
      %c0_8 = arith.constant 0 : index
      %15 = vector.load %arg6[%c0_7, %c0_8] : memref<128x1xf32, #tpu.memory_space<vmem>>, vector<128x1xf32>
      %cst_9 = arith.constant dense<0.000000e+00> : vector<128x1xf32>
      %16 = vector.multi_reduction <add>, %11, %cst_9 [0] : vector<1x128x1xf32> to vector<128x1xf32>
      %17 = arith.addf %15, %16 : vector<128x1xf32>
      %c0_10 = arith.constant 0 : index
      %c0_11 = arith.constant 0 : index
      %18 = vector.load %arg6[%c0_10, %c0_11] : memref<128x1xf32, #tpu.memory_space<vmem>>, vector<128x1xf32>
      tpu.vector_store %arg6[%c0_10, %c0_11], %17 {strides = array<i32>} : memref<128x1xf32, #tpu.memory_space<vmem>>, vector<128x1xf32>,
      %c0_12 = arith.constant 0 : index
      %c0_13 = arith.constant 0 : index
      %19 = vector.load %arg7[%c0_12, %c0_13] : memref<128x1xf32, #tpu.memory_space<vmem>>, vector<128x1xf32>
      %cst_14 = arith.constant dense<0.000000e+00> : vector<128x1xf32>
      %20 = vector.multi_reduction <add>, %14, %cst_14 [0] : vector<1x128x1xf32> to vector<128x1xf32>
      %21 = arith.addf %19, %20 : vector<128x1xf32>
      %c0_15 = arith.constant 0 : index
      %c0_16 = arith.constant 0 : index
      %22 = vector.load %arg7[%c0_15, %c0_16] : memref<128x1xf32, #tpu.memory_space<vmem>>, vector<128x1xf32>
      tpu.vector_store %arg7[%c0_15, %c0_16], %21 {strides = array<i32>} : memref<128x1xf32, #tpu.memory_space<vmem>>, vector<128x1xf32>,
      %c0_i32_17 = arith.constant 0 : i32
      %23 = arith.cmpi eq, %arg1, %c0_i32_17 : i32
      %24 = arith.extui %23 : i1 to i32
      %c0_i32_18 = arith.constant 0 : i32
      %25 = arith.cmpi ne, %24, %c0_i32_18 : i32
      scf.if %25 {
        %c0_19 = arith.constant 0 : index
        %c0_20 = arith.constant 0 : index
        %26 = vector.load %arg6[%c0_19, %c0_20] : memref<128x1xf32, #tpu.memory_space<vmem>>, vector<128x1xf32>
        %cst_21 = arith.constant 0.00510204071 : f32
        %27 = vector.broadcast %cst_21 : f32 to vector<128x1xf32>
        %28 = arith.mulf %26, %27 : vector<128x1xf32>
        %c0_22 = arith.constant 0 : index
        %c0_23 = arith.constant 0 : index
        %29 = vector.load %arg7[%c0_22, %c0_23] : memref<128x1xf32, #tpu.memory_space<vmem>>, vector<128x1xf32>
        %cst_24 = arith.constant 0.00510204071 : f32
        %30 = vector.broadcast %cst_24 : f32 to vector<128x1xf32>
        %31 = arith.mulf %29, %30 : vector<128x1xf32>
        %32 = arith.mulf %28, %28 : vector<128x1xf32>
        %33 = arith.subf %31, %32 : vector<128x1xf32>
        %cst_25 = arith.constant 0.000000e+00 : f32
        %34 = vector.broadcast %cst_25 : f32 to vector<128x1xf32>
        %35 = arith.maximumf %33, %34 : vector<128x1xf32>
        %cst_26 = arith.constant 1.000000e-03 : f32
        %36 = vector.broadcast %cst_26 : f32 to vector<128x1xf32>
        %37 = arith.addf %35, %36 : vector<128x1xf32>
        %38 = math.rsqrt %37 : vector<128x1xf32>
        %c0_27 = arith.constant 0 : index
        %c0_28 = arith.constant 0 : index
        %39 = vector.load %arg3[%c0_27, %c0_28] : memref<128x1xf32, #tpu.memory_space<vmem>>, vector<128x1xf32>
        %40 = arith.mulf %39, %38 : vector<128x1xf32>
        %c0_29 = arith.constant 0 : index
        %c0_30 = arith.constant 0 : index
        %41 = vector.load %arg8[%c0_29, %c0_30] : memref<128x1xf32, #tpu.memory_space<vmem>>, vector<128x1xf32>
        tpu.vector_store %arg8[%c0_29, %c0_30], %40 {strides = array<i32>} : memref<128x1xf32, #tpu.memory_space<vmem>>, vector<128x1xf32>,
        %c0_31 = arith.constant 0 : index
        %c0_32 = arith.constant 0 : index
        %42 = vector.load %arg4[%c0_31, %c0_32] : memref<128x1xf32, #tpu.memory_space<vmem>>, vector<128x1xf32>
        %43 = arith.mulf %28, %40 : vector<128x1xf32>
        %44 = arith.subf %42, %43 : vector<128x1xf32>
        %c0_33 = arith.constant 0 : index
        %c0_34 = arith.constant 0 : index
        %45 = vector.load %arg9[%c0_33, %c0_34] : memref<128x1xf32, #tpu.memory_space<vmem>>, vector<128x1xf32>
        tpu.vector_store %arg9[%c0_33, %c0_34], %44 {strides = array<i32>} : memref<128x1xf32, #tpu.memory_space<vmem>>, vector<128x1xf32>,
      } else {
      }
    } else {
    }
    %c1_i32 = arith.constant 1 : i32
    %3 = arith.cmpi eq, %arg0, %c1_i32 : i32
    %4 = arith.extui %3 : i1 to i32
    %c0_i32_1 = arith.constant 0 : i32
    %5 = arith.cmpi ne, %4, %c0_i32_1 : i32
    scf.if %5 {
      %c0 = arith.constant 0 : index
      %c0_2 = arith.constant 0 : index
      %c0_3 = arith.constant 0 : index
      %6 = vector.load %arg2[%c0, %c0_2, %c0_3] : memref<1x128x196xf32, #tpu.memory_space<vmem>>, vector<1x128x196xf32>
      %c0_4 = arith.constant 0 : index
      %c0_5 = arith.constant 0 : index
      %7 = vector.load %arg8[%c0_4, %c0_5] : memref<128x1xf32, #tpu.memory_space<vmem>>, vector<128x1xf32>
      %8 = vector.shape_cast %7 : vector<128x1xf32> to vector<1x128x1xf32>
      %9 = vector.broadcast %8 : vector<1x128x1xf32> to vector<1x128x196xf32>
      %10 = arith.mulf %6, %9 : vector<1x128x196xf32>
      %c0_6 = arith.constant 0 : index
      %c0_7 = arith.constant 0 : index
      %11 = vector.load %arg9[%c0_6, %c0_7] : memref<128x1xf32, #tpu.memory_space<vmem>>, vector<128x1xf32>
      %12 = vector.shape_cast %11 : vector<128x1xf32> to vector<1x128x1xf32>
      %13 = vector.broadcast %12 : vector<1x128x1xf32> to vector<1x128x196xf32>
      %14 = arith.addf %10, %13 : vector<1x128x196xf32>
      %c0_8 = arith.constant 0 : index
      %c0_9 = arith.constant 0 : index
      %c0_10 = arith.constant 0 : index
      %15 = vector.load %arg5[%c0_8, %c0_9, %c0_10] : memref<1x128x196xf32, #tpu.memory_space<vmem>>, vector<1x128x196xf32>
      tpu.vector_store %arg5[%c0_8, %c0_9, %c0_10], %14 {strides = array<i32>} : memref<1x128x196xf32, #tpu.memory_space<vmem>>, vector<1x128x196xf32>,
    } else {
    }
    return
  }
  func.func @transform_0(%arg0: i32, %arg1: i32) -> (i32, i32, i32) {
    %c0_i32 = arith.constant 0 : i32
    %c0_i32_0 = arith.constant 0 : i32
    %c0_i32_1 = arith.constant 0 : i32
    return %arg1, %c0_i32, %c0_i32_0 : i32, i32, i32
  }
  func.func @transform_1(%arg0: i32, %arg1: i32) -> (i32, i32) {
    %c0_i32 = arith.constant 0 : i32
    %c0_i32_0 = arith.constant 0 : i32
    %c0_i32_1 = arith.constant 0 : i32
    return %c0_i32, %c0_i32_0 : i32, i32
  }
  func.func @transform_2(%arg0: i32, %arg1: i32) -> (i32, i32) {
    %c0_i32 = arith.constant 0 : i32
    %c0_i32_0 = arith.constant 0 : i32
    %c0_i32_1 = arith.constant 0 : i32
    return %c0_i32, %c0_i32_0 : i32, i32
  }
  func.func @transform_3(%arg0: i32, %arg1: i32) -> (i32, i32, i32) {
    %0 = arith.muli %arg1, %arg0 : i32
    %c0_i32 = arith.constant 0 : i32
    %c0_i32_0 = arith.constant 0 : i32
    %c0_i32_1 = arith.constant 0 : i32
    return %0, %c0_i32, %c0_i32_0 : i32, i32, i32
  }
}

</mosaic_0001>

<bundles_post_ra>
// kernel: batchnorm2d.1
= control target key start
LH: loop header
LB: loop body
LE: loop exit
PB: predicated region body
PF: predicated region fallthrough
CT: control target
= control target key end

     0   :  { %s1322_s12 = smov 0   ;;  %s1324_s13 = smov 0   ;;  %s2168_s0 = inlined_call_operand.vmem [shape: f32[1,128,196], index: 0, kind: input, shape index: {}]   ;;  %s2169_s1 = inlined_call_operand.vmem [shape: f32[128,1], index: 1, kind: input, shape index: {}]   ;;  %s2170_s2 = inlined_call_operand.vmem [shape: f32[128,1], index: 2, kind: input, shape index: {}]   ;;  %s2171_s3 = inlined_call_operand.vmem [shape: f32[1,128,196], index: 3, kind: output, shape index: {}]  }
   0x1   :  { %s1326_s14 = smov 0  }
   0x2 LB: > { %s25_s15 = sadd.s32 1, %s1294_s13  ;;  %p1209_p0 = scmp.ge.s32.totalorder %s1298_s14, 1  ;;  %s1298_s14 = sphi %s1326_s14, %s13_s14   ;;  %s1294_s13 = sphi %s1324_s13, %s2173_s13   ;;  %s1290_s12 = sphi %s1322_s12, %s2172_s12  }
   0x3   : > { %p27_p1 = scmp.ge.s32.totalorder %s25_s15, 2  ;;  %p151_p2 = scmp.lt.s32.totalorder %s1298_s14, 3 }
   0x5   : > { %s2175_s15 = smov (%p27_p1, %s25_s15), 0  ;;  %p152_p3 = pnand %p1209_p0, %p151_p2 }
   0x6   : > { %p1210_p4 = scmp.ne.s32.totalorder (!%p152_p3), %s1290_s12, 0 }
   0x7   : > { %155 = sbr.rel (%p152_p3) target bundleno = 456 (0x1c8), region = 32 }
   0xc   : > { %191 = sbr.rel (%p1210_p4) target bundleno = 259 (0x103), region = 36 }
  0x11   : > { %v1346_v0 = vld [vmem:[%s2168_s0 + $0x20] sm:$0xff]  ;;  %v1351_v1 = vld [vmem:[%s2168_s0 + $0x28] sm:$0xff]  ;;  %vm261_vm0 = vcmask 556032   ;;  %v1368_v5 = vld [vmem:[%s2168_s0 + $0x30] sm:$0xff]  ;;  %vm196_vm1 = vcmask 7168   ;;  %v1300_v61 = vmov 0.0  }
  0x12   : > { %v1356_v2 = vld [vmem:[%s2168_s0] sm:$0xff]  ;;  %v270_v3 = vsel %vm261_vm0, %v1351_v1, 0.0  ;;  %v1363_v4 = vld [vmem:[%s2168_s0 + $0x8] sm:$0xff]  ;;  %v1373_v6 = vld [vmem:[%s2168_s0 + $0x38] sm:$0xff]  ;;  %199 = vst.msk [vmem:[#allocation2 + $0x10] sm:$0xff] %vm196_vm1, %v1300_v61 }
  0x13   : > { %v271_v7 = vadd.f32 %v270_v3, %v1346_v0  ;;  %v262_v8 = vsel %vm261_vm0, %v1363_v4, 0.0  ;;  %v274_v9 = vsel %vm261_vm0, %v1373_v6, 0.0  ;;  %v1383_v10 = vld [vmem:[%s2168_s0 + $0x10] sm:$0xff]  ;;  %v232_v11 = vld [vmem:[%s2168_s0 + $0x18] sm:$0xff]  ;;  %v1398_v15 = vld [vmem:[%s2168_s0 + $0x48] sm:$0xff]  ;;  %197 = vst.msk [vmem:[#allocation2] sm:$0xff] %vm196_vm1, %v1300_v61  ;;  %v327_v62 = vmul.f32 %v1363_v4, %v1363_v4 }
  0x14   : > { %v263_v12 = vadd.f32 %v262_v8, %v1356_v2  ;;  %v266_v13 = vsel %vm261_vm0, %v232_v11, 0.0  ;;  %v1393_v14 = vld [vmem:[%s2168_s0 + $0x58] sm:$0xff]  ;;  %v275_v16 = vadd.f32 %v274_v9, %v1368_v5  ;;  %v1405_v18 = vld [vmem:[%s2168_s0 + $0x50] sm:$0xff]  ;;  %v1412_v20 = vld [vmem:[%s2168_s0 + $0x40] sm:$0xff]  ;;  %v278_v21 = vsel %vm261_vm0, %v1398_v15, 0.0  ;;  %198 = vst.msk [vmem:[#allocation2 + $0x8] sm:$0xff] %vm196_vm1, %v1300_v61 }
  0x15   : > { %272 = vadd.xlane.f32.xlu1 %v271_v7  ;;  %v267_v17 = vadd.f32 %v266_v13, %v1383_v10  ;;  %v282_v19 = vsel %vm261_vm0, %v1393_v14, 0.0  ;;  %v1419_v22 = vld [vmem:[%s2168_s0 + $0x78] sm:$0xff]  ;;  %v1424_v23 = vld [vmem:[%s2168_s0 + $0x68] sm:$0xff]  ;;  %v279_v25 = vadd.f32 %v278_v21, %v1412_v20  ;;  %v1431_v26 = vld [vmem:[%s2168_s0 + $0x70] sm:$0xff]  ;;  %v329_v60 = vmul.f32 %v232_v11, %v232_v11  ;;  %200 = vst.msk [vmem:[#allocation2 + $0x18] sm:$0xff] %vm196_vm1, %v1300_v61 }
  0x16   : > { %264 = vadd.xlane.f32.xlu0 %v263_v12  ;;  %v283_v24 = vadd.f32 %v282_v19, %v1405_v18  ;;  %v290_v27 = vsel %vm261_vm0, %v1419_v22, 0.0  ;;  %v1438_v28 = vld [vmem:[%s2168_s0 + $0x60] sm:$0xff]  ;;  %v286_v29 = vsel %vm261_vm0, %v1424_v23, 0.0  ;;  %v1445_v30 = vld [vmem:[%s2168_s0 + $0x98] sm:$0xff]  ;;  %v1450_v31 = vld [vmem:[%s2168_s0 + $0x88] sm:$0xff]  ;;  %201 = vst.msk [vmem:[#allocation2 + $0x20] sm:$0xff] %vm196_vm1, %v1300_v61  ;;  %v328_v8 = vmul.f32 %v1383_v10, %v1383_v10 }
  0x17   : > { %v291_v32 = vadd.f32 %v290_v27, %v1431_v26  ;;  %v287_v33 = vadd.f32 %v286_v29, %v1438_v28  ;;  %v1457_v34 = vld [vmem:[%s2168_s0 + $0x90] sm:$0xff]  ;;  %v298_v35 = vsel %vm261_vm0, %v1445_v30, 0.0  ;;  %v1464_v36 = vld [vmem:[%s2168_s0 + $0x80] sm:$0xff]  ;;  %v294_v37 = vsel %vm261_vm0, %v1450_v31, 0.0  ;;  %v1471_v38 = vld [vmem:[%s2168_s0 + $0xb8] sm:$0xff]  ;;  %202 = vst.msk [vmem:[#allocation2 + $0x28] sm:$0xff] %vm196_vm1, %v1300_v61 }
  0x18   : > { %v1476_v39 = vld [vmem:[%s2168_s0 + $0xa8] sm:$0xff]  ;;  %v299_v40 = vadd.f32 %v298_v35, %v1457_v34  ;;  %v295_v41 = vadd.f32 %v294_v37, %v1464_v36  ;;  %v1483_v42 = vld [vmem:[%s2168_s0 + $0xb0] sm:$0xff]  ;;  %v306_v43 = vsel %vm261_vm0, %v1471_v38, 0.0  ;;  %v1490_v44 = vld [vmem:[%s2168_s0 + $0xa0] sm:$0xff]  ;;  %203 = vst.msk [vmem:[#allocation2 + $0x30] sm:$0xff] %vm196_vm1, %v1300_v61  ;;  %v326_v9 = vmul.f32 %v1356_v2, %v1356_v2 }
  0x19   : > { %276 = vadd.xlane.f32.xlu1 %v275_v16  ;;  %v302_v45 = vsel %vm261_vm0, %v1476_v39, 0.0  ;;  %v1497_v46 = vld [vmem:[%s2168_s0 + $0xd8] sm:$0xff]  ;;  %v1502_v47 = vld [vmem:[%s2168_s0 + $0xc8] sm:$0xff]  ;;  %v307_v48 = vadd.f32 %v306_v43, %v1483_v42  ;;  %v1509_v50 = vld [vmem:[%s2168_s0 + $0xd0] sm:$0xff]  ;;  %204 = vst.msk [vmem:[#allocation2 + $0x38] sm:$0xff] %vm196_vm1, %v1300_v61  ;;  %v362_v11 = vsel %vm261_vm0, %v329_v60, 0.0  ;;  %v333_v12 = vmul.f32 %v1373_v6, %v1373_v6 }
  0x1a   : > { %268 = vadd.xlane.f32.xlu0 %v267_v17  ;;  %v303_v49 = vadd.f32 %v302_v45, %v1490_v44  ;;  %v314_v51 = vsel %vm261_vm0, %v1497_v46, 0.0  ;;  %v1516_v52 = vld [vmem:[%s2168_s0 + $0xc0] sm:$0xff]  ;;  %v310_v53 = vsel %vm261_vm0, %v1502_v47, 0.0  ;;  %v1523_v54 = vld [vmem:[%s2168_s0 + $0xf8] sm:$0xff]  ;;  %v1528_v55 = vld [vmem:[%s2168_s0 + $0xe8] sm:$0xff]  ;;  %205 = vst.msk [vmem:[#allocation2 + $0x40] sm:$0xff] %vm196_vm1, %v1300_v61  ;;  %v331_v13 = vmul.f32 %v1351_v1, %v1351_v1 }
  0x1b   : > { %v315_v56 = vadd.f32 %v314_v51, %v1509_v50  ;;  %v311_v57 = vadd.f32 %v310_v53, %v1516_v52  ;;  %v1535_v58 = vld [vmem:[%s2168_s0 + $0xf0] sm:$0xff]  ;;  %v322_v59 = vsel %vm261_vm0, %v1523_v54, 0.0  ;;  %206 = vst.msk [vmem:[#allocation2 + $0x48] sm:$0xff] %vm196_vm1, %v1300_v61  ;;  %207 = vst.msk [vmem:[#allocation2 + $0x50] sm:$0xff] %vm196_vm1, %v1300_v61  ;;  %v1576_v63 = vld [vmem:[%s2168_s0 + $0xe0] sm:$0xff]  ;;  %v318_v3 = vsel %vm261_vm0, %v1528_v55, 0.0 }
  0x1c   : > { %208 = vst.msk [vmem:[#allocation2 + $0x58] sm:$0xff] %vm196_vm1, %v1300_v61  ;;  %209 = vst.msk [vmem:[#allocation2 + $0x60] sm:$0xff] %vm196_vm1, %v1300_v61  ;;  %v323_v7 = vadd.f32 %v322_v59, %v1535_v58  ;;  %v319_v4 = vadd.f32 %v318_v3, %v1576_v63  ;;  %v358_v16 = vsel %vm261_vm0, %v327_v62, 0.0  ;;  %v363_v17 = vadd.f32 %v362_v11, %v328_v8 }
  0x1d   : > { %284 = vadd.xlane.f32.xlu1 %v283_v24  ;;  %210 = vst.msk [vmem:[#allocation2 + $0x68] sm:$0xff] %vm196_vm1, %v1300_v61  ;;  %211 = vst.msk [vmem:[#allocation2 + $0x70] sm:$0xff] %vm196_vm1, %v1300_v61  ;;  %v332_v10 = vmul.f32 %v1368_v5, %v1368_v5  ;;  %v330_v2 = vmul.f32 %v1346_v0, %v1346_v0  ;;  %v359_v19 = vadd.f32 %v358_v16, %v326_v9  ;;  %v425_v16 = vld [vmem:[#allocation2 + $0x18] sm:$0xff] }
  0x1e   : > { %280 = vadd.xlane.f32.xlu0 %v279_v25  ;;  %212 = vst.msk [vmem:[#allocation2 + $0x78] sm:$0xff] %vm196_vm1, %v1300_v61  ;;  %213 = vst.msk [vmem:[#allocation3] sm:$0xff] %vm196_vm1, %v1300_v61  ;;  %v370_v21 = vsel %vm261_vm0, %v333_v12, 0.0  ;;  %v337_v6 = vmul.f32 %v1393_v14, %v1393_v14  ;;  %v366_v24 = vsel %vm261_vm0, %v331_v13, 0.0  ;;  %v335_v1 = vmul.f32 %v1398_v15, %v1398_v15 }
  0x1f   : > { %214 = vst.msk [vmem:[#allocation3 + $0x8] sm:$0xff] %vm196_vm1, %v1300_v61  ;;  %215 = vst.msk [vmem:[#allocation3 + $0x10] sm:$0xff] %vm196_vm1, %v1300_v61  ;;  %v371_v25 = vadd.f32 %v370_v21, %v332_v10  ;;  %v336_v5 = vmul.f32 %v1405_v18, %v1405_v18  ;;  %v367_v27 = vadd.f32 %v366_v24, %v330_v2  ;;  %v427_v21 = vld [vmem:[#allocation2 + $0x28] sm:$0xff] }
  0x20   : > { %216 = vst.msk [vmem:[#allocation3 + $0x18] sm:$0xff] %vm196_vm1, %v1300_v61  ;;  %217 = vst.msk [vmem:[#allocation3 + $0x20] sm:$0xff] %vm196_vm1, %v1300_v61  ;;  %v378_v0 = vsel %vm261_vm0, %v337_v6, 0.0  ;;  %v334_v29 = vmul.f32 %v1412_v20, %v1412_v20  ;;  %v341_v14 = vmul.f32 %v1419_v22, %v1419_v22  ;;  %v339_v15 = vmul.f32 %v1424_v23, %v1424_v23  ;;  %v426_v6 = vld [vmem:[#allocation2 + $0x20] sm:$0xff] }
  0x21   : > { %292 = vadd.xlane.f32.xlu1 %v291_v32  ;;  %218 = vst.msk [vmem:[#allocation3 + $0x28] sm:$0xff] %vm196_vm1, %v1300_v61  ;;  %219 = vst.msk [vmem:[#allocation3 + $0x30] sm:$0xff] %vm196_vm1, %v1300_v61  ;;  %v374_v32 = vsel %vm261_vm0, %v335_v1, 0.0  ;;  %v340_v18 = vmul.f32 %v1431_v26, %v1431_v26  ;;  %v338_v20 = vmul.f32 %v1438_v28, %v1438_v28 }
  0x22   : > { %288 = vadd.xlane.f32.xlu0 %v287_v33  ;;  %220 = vst.msk [vmem:[#allocation3 + $0x38] sm:$0xff] %vm196_vm1, %v1300_v61  ;;  %221 = vst.msk [vmem:[#allocation3 + $0x40] sm:$0xff] %vm196_vm1, %v1300_v61  ;;  %v379_v33 = vadd.f32 %v378_v0, %v336_v5  ;;  %v375_v35 = vadd.f32 %v374_v32, %v334_v29  ;;  %v386_v37 = vsel %vm261_vm0, %v341_v14, 0.0  ;;  %v428_v0 = vld [vmem:[#allocation2 + $0x30] sm:$0xff] }
  0x23   : > { %222 = vst.msk [vmem:[#allocation3 + $0x48] sm:$0xff] %vm196_vm1, %v1300_v61  ;;  %223 = vst.msk [vmem:[#allocation3 + $0x50] sm:$0xff] %vm196_vm1, %v1300_v61  ;;  %v345_v22 = vmul.f32 %v1445_v30, %v1445_v30  ;;  %v343_v23 = vmul.f32 %v1450_v31, %v1450_v31  ;;  %v344_v26 = vmul.f32 %v1457_v34, %v1457_v34 }
  0x24   : > { %224 = vst.msk [vmem:[#allocation3 + $0x58] sm:$0xff] %vm196_vm1, %v1300_v61  ;;  %225 = vst.msk [vmem:[#allocation3 + $0x60] sm:$0xff] %vm196_vm1, %v1300_v61  ;;  %v342_v28 = vmul.f32 %v1464_v36, %v1464_v36  ;;  %v349_v30 = vmul.f32 %v1471_v38, %v1471_v38  ;;  %v347_v31 = vmul.f32 %v1476_v39, %v1476_v39 }
  0x25   : > { %300 = vadd.xlane.f32.xlu1 %v299_v40  ;;  %226 = vst.msk [vmem:[#allocation3 + $0x68] sm:$0xff] %vm196_vm1, %v1300_v61  ;;  %227 = vst.msk [vmem:[#allocation3 + $0x70] sm:$0xff] %vm196_vm1, %v1300_v61  ;;  %v382_v40 = vsel %vm261_vm0, %v339_v15, 0.0  ;;  %v394_v45 = vsel %vm261_vm0, %v345_v22, 0.0  ;;  %v348_v34 = vmul.f32 %v1483_v42, %v1483_v42  ;;  %v346_v36 = vmul.f32 %v1490_v44, %v1490_v44 }
  0x26   : > { %296 = vadd.xlane.f32.xlu0 %v295_v41  ;;  %228 = vst.msk [vmem:[#allocation3 + $0x78] sm:$0xff] %vm196_vm1, %v1300_v61  ;;  %v387_v41 = vadd.f32 %v386_v37, %v340_v18  ;;  %v383_v43 = vadd.f32 %v382_v40, %v338_v20  ;;  %v402_v53 = vsel %vm261_vm0, %v349_v30, 0.0  ;;  %v353_v38 = vmul.f32 %v1497_v46, %v1497_v46  ;;  %v430_v18 = vld [vmem:[#allocation2 + $0x40] sm:$0xff]  ;;  %v433_v40 = vld [vmem:[#allocation2 + $0x58] sm:$0xff] }
  0x27   : > { %v351_v39 = vmul.f32 %v1502_v47, %v1502_v47  ;;  %v352_v42 = vmul.f32 %v1509_v50, %v1509_v50  ;;  %v350_v44 = vmul.f32 %v1516_v52, %v1516_v52  ;;  %v357_v46 = vmul.f32 %v1523_v54, %v1523_v54  ;;  %v434_v30 = vld [vmem:[#allocation2 + $0x60] sm:$0xff] }
  0x28   : > { %v410_v60 = vsel %vm261_vm0, %v353_v38, 0.0  ;;  %v355_v47 = vmul.f32 %v1528_v55, %v1528_v55  ;;  %v356_v50 = vmul.f32 %v1535_v58, %v1535_v58  ;;  %v354_v52 = vmul.f32 %v1576_v63, %v1576_v63  ;;  %v424_v55 = vld [vmem:[#allocation2 + $0x10] sm:$0xff] }
  0x29   : > { %308 = vadd.xlane.f32.xlu1 %v307_v48  ;;  %v390_v48 = vsel %vm261_vm0, %v343_v23, 0.0  ;;  %v406_v61 = vsel %vm261_vm0, %v351_v39, 0.0  ;;  %v411_v62 = vadd.f32 %v410_v60, %v352_v42  ;;  %v432_v23 = vld [vmem:[#allocation2 + $0x50] sm:$0xff]  ;;  %v487_v42 = vld [vmem:[#allocation3] sm:$0xff] }
  0x2a   : > { %304 = vadd.xlane.f32.xlu0 %v303_v49  ;;  %v395_v49 = vadd.f32 %v394_v45, %v344_v26  ;;  %v391_v51 = vadd.f32 %v390_v48, %v342_v28  ;;  %v407_v3 = vadd.f32 %v406_v61, %v350_v44  ;;  %v414_v8 = vsel %vm261_vm0, %v355_v47, 0.0  ;;  %v435_v28 = vld [vmem:[#allocation2 + $0x68] sm:$0xff]  ;;  %v490_v61 = vld [vmem:[#allocation3 + $0x18] sm:$0xff]  ;;  %v489_v47 = vld [vmem:[#allocation3 + $0x10] sm:$0xff] }
  0x2b   : > { %v415_v9 = vadd.f32 %v414_v8, %v354_v52 }
  0x2d   : > { %316 = vadd.xlane.f32.xlu1 %v315_v56  ;;  %v398_v56 = vsel %vm261_vm0, %v347_v31, 0.0 }
  0x2e   : > { %312 = vadd.xlane.f32.xlu0 %v311_v57  ;;  %v403_v57 = vadd.f32 %v402_v53, %v348_v34  ;;  %v399_v59 = vadd.f32 %v398_v56, %v346_v36  ;;  %v436_v53 = vld [vmem:[#allocation2 + $0x70] sm:$0xff] }
  0x31   : > { %324 = vadd.xlane.f32.xlu1 %v323_v7  ;;  %v418_v7 = vsel %vm261_vm0, %v357_v46, 0.0 }
  0x32   : > { %320 = vadd.xlane.f32.xlu0 %v319_v4  ;;  %v419_v54 = vadd.f32 %v418_v7, %v356_v50  ;;  %v422_v4 = vld [vmem:[#allocation2] sm:$0xff] }
  0x35   : > { %364 = vadd.xlane.f32.xlu1 %v363_v17  ;;  %v423_v17 = vld [vmem:[#allocation2 + $0x8] sm:$0xff] }
  0x36   : > { %360 = vadd.xlane.f32.xlu0 %v359_v19 }
  0x39   : > { %372 = vadd.xlane.f32.xlu1 %v371_v25 }
  0x3a   : > { %368 = vadd.xlane.f32.xlu0 %v367_v27  ;;  %v429_v27 = vld [vmem:[#allocation2 + $0x38] sm:$0xff] }
  0x3d   : > { %380 = vadd.xlane.f32.xlu1 %v379_v33  ;;  %v431_v33 = vld [vmem:[#allocation2 + $0x48] sm:$0xff] }
  0x3e   : > { %376 = vadd.xlane.f32.xlu0 %v375_v35 }
  0x41   : > { %388 = vadd.xlane.f32.xlu1 %v387_v41 }
  0x42   : > { %384 = vadd.xlane.f32.xlu0 %v383_v43 }
  0x45   : > { %396 = vadd.xlane.f32.xlu1 %v395_v49 }
  0x46   : > { %392 = vadd.xlane.f32.xlu0 %v391_v51  ;;  %v437_v51 = vld [vmem:[#allocation2 + $0x78] sm:$0xff] }
  0x49   : > { %404 = vadd.xlane.f32.xlu1 %v403_v57  ;;  %v488_v57 = vld [vmem:[#allocation3 + $0x8] sm:$0xff] }
  0x4a   : > { %400 = vadd.xlane.f32.xlu0 %v399_v59 }
  0x4d   : > { %412 = vadd.xlane.f32.xlu1 %v411_v62 }
  0x4e   : > { %408 = vadd.xlane.f32.xlu0 %v407_v3 }
  0x51   : > { %420 = vadd.xlane.f32.xlu1 %v419_v54  ;;  %v492_v54 = vld [vmem:[#allocation3 + $0x28] sm:$0xff] }
  0x52   : > { %416 = vadd.xlane.f32.xlu0 %v415_v9 }
  0x9e   : > { %v273_v11 = vpop.xlane.xlu1 %272 }
  0x9f   : > { %v456_v12 = vadd.f32 %v424_v55, %v273_v11  ;;  %v265_v58 = vpop.xlane.xlu0 %264 }
  0xa0   : > { %v454_v13 = vadd.f32 %v422_v4, %v265_v58  ;;  %v491_v4 = vld [vmem:[#allocation3 + $0x20] sm:$0xff] }
  0xa1   : > { %473 = vst.msk [vmem:[#allocation2 + $0x10] sm:$0xff] %vm196_vm1, %v456_v12 }
  0xa2   : > { %471 = vst.msk [vmem:[#allocation2] sm:$0xff] %vm196_vm1, %v454_v13  ;;  %v277_v63 = vpop.xlane.xlu1 %276 }
  0xa3   : > { %v457_v10 = vadd.f32 %v425_v16, %v277_v63  ;;  %v269_v2 = vpop.xlane.xlu0 %268 }
  0xa4   : > { %v455_v19 = vadd.f32 %v423_v17, %v269_v2 }
  0xa5   : > { %474 = vst.msk [vmem:[#allocation2 + $0x18] sm:$0xff] %vm196_vm1, %v457_v10  ;;  %v494_v10 = vld [vmem:[#allocation3 + $0x38] sm:$0xff] }
  0xa6   : > { %472 = vst.msk [vmem:[#allocation2 + $0x8] sm:$0xff] %vm196_vm1, %v455_v19  ;;  %v285_v24 = vpop.xlane.xlu1 %284 }
  0xa7   : > { %v459_v1 = vadd.f32 %v427_v21, %v285_v24  ;;  %v281_v25 = vpop.xlane.xlu0 %280  ;;  %v493_v24 = vld [vmem:[#allocation3 + $0x30] sm:$0xff] }
  0xa8   : > { %v458_v5 = vadd.f32 %v426_v6, %v281_v25  ;;  %v556_v9 = vld [vmem:[#allocation2 + $0x10] sm:$0xff] }
  0xa9   : > { %476 = vst.msk [vmem:[#allocation2 + $0x28] sm:$0xff] %vm196_vm1, %v459_v1  ;;  %v554_v3 = vld [vmem:[#allocation2] sm:$0xff]  ;;  %v1682_v2 = vmul.f32 0.0051020407, %v556_v9 }
  0xaa   : > { %475 = vst.msk [vmem:[#allocation2 + $0x20] sm:$0xff] %vm196_vm1, %v458_v5  ;;  %v293_v29 = vpop.xlane.xlu1 %292  ;;  %v1679_v11 = vmul.f32 0.0051020407, %v554_v3 }
  0xab   : > { %v461_v14 = vadd.f32 %v429_v27, %v293_v29  ;;  %v289_v32 = vpop.xlane.xlu0 %288 }
  0xac   : > { %v460_v15 = vadd.f32 %v428_v0, %v289_v32  ;;  %v557_v12 = vld [vmem:[#allocation2 + $0x18] sm:$0xff]  ;;  %v618_v29 = vmul.f32 %v1679_v11, %v1679_v11 }
  0xad   : > { %478 = vst.msk [vmem:[#allocation2 + $0x38] sm:$0xff] %vm196_vm1, %v461_v14  ;;  %v555_v62 = vld [vmem:[#allocation2 + $0x8] sm:$0xff]  ;;  %v1684_v1 = vmul.f32 0.0051020407, %v557_v12 }
  0xae   : > { %477 = vst.msk [vmem:[#allocation2 + $0x30] sm:$0xff] %vm196_vm1, %v460_v15  ;;  %v301_v35 = vpop.xlane.xlu1 %300  ;;  %v1676_v55 = vmul.f32 0.0051020407, %v555_v62 }
  0xaf   : > { %v463_v37 = vadd.f32 %v431_v33, %v301_v35  ;;  %v297_v20 = vpop.xlane.xlu0 %296 }
  0xb0   : > { %v462_v22 = vadd.f32 %v430_v18, %v297_v20  ;;  %v559_v13 = vld [vmem:[#allocation2 + $0x28] sm:$0xff]  ;;  %v619_v25 = vmul.f32 %v1676_v55, %v1676_v55 }
  0xb1   : > { %480 = vst.msk [vmem:[#allocation2 + $0x48] sm:$0xff] %vm196_vm1, %v463_v37  ;;  %v558_v16 = vld [vmem:[#allocation2 + $0x20] sm:$0xff]  ;;  %v1691_v14 = vmul.f32 0.0051020407, %v559_v13 }
  0xb2   : > { %479 = vst.msk [vmem:[#allocation2 + $0x40] sm:$0xff] %vm196_vm1, %v462_v22  ;;  %v309_v41 = vpop.xlane.xlu1 %308  ;;  %v1693_v32 = vmul.f32 0.0051020407, %v558_v16 }
  0xb3   : > { %v465_v26 = vadd.f32 %v433_v40, %v309_v41  ;;  %v305_v43 = vpop.xlane.xlu0 %304 }
  0xb4   : > { %v464_v45 = vadd.f32 %v432_v23, %v305_v43  ;;  %v561_v19 = vld [vmem:[#allocation2 + $0x38] sm:$0xff]  ;;  %v620_v43 = vmul.f32 %v1682_v2, %v1682_v2 }
  0xb5   : > { %482 = vst.msk [vmem:[#allocation2 + $0x58] sm:$0xff] %vm196_vm1, %v465_v26  ;;  %v560_v5 = vld [vmem:[#allocation2 + $0x30] sm:$0xff]  ;;  %v1696_v18 = vmul.f32 0.0051020407, %v561_v19  ;;  %v496_v26 = vld [vmem:[#allocation3 + $0x48] sm:$0xff] }
  0xb6   : > { %481 = vst.msk [vmem:[#allocation2 + $0x50] sm:$0xff] %vm196_vm1, %v464_v45  ;;  %v317_v48 = vpop.xlane.xlu1 %316  ;;  %v1698_v22 = vmul.f32 0.0051020407, %v560_v5  ;;  %v621_v45 = vmul.f32 %v1684_v1, %v1684_v1 }
  0xb7   : > { %v467_v31 = vadd.f32 %v435_v28, %v317_v48  ;;  %v313_v49 = vpop.xlane.xlu0 %312 }
  0xb8   : > { %v466_v34 = vadd.f32 %v434_v30, %v313_v49  ;;  %v563_v28 = vld [vmem:[#allocation2 + $0x48] sm:$0xff]  ;;  %v495_v49 = vld [vmem:[#allocation3 + $0x40] sm:$0xff] }
  0xb9   : > { %484 = vst.msk [vmem:[#allocation2 + $0x68] sm:$0xff] %vm196_vm1, %v467_v31 }
  0xba   : > { %483 = vst.msk [vmem:[#allocation2 + $0x60] sm:$0xff] %vm196_vm1, %v466_v34  ;;  %v325_v36 = vpop.xlane.xlu1 %324  ;;  %v623_v34 = vmul.f32 %v1691_v14, %v1691_v14 }
  0xbb   : > { %v469_v38 = vadd.f32 %v437_v51, %v325_v36  ;;  %v321_v56 = vpop.xlane.xlu0 %320  ;;  %v622_v51 = vmul.f32 %v1693_v32, %v1693_v32 }
  0xbc   : > { %v468_v39 = vadd.f32 %v436_v53, %v321_v56  ;;  %v1712_v56 = vmul.f32 %v1696_v18, %v1696_v18 }
  0xbd   : > { %486 = vst.msk [vmem:[#allocation2 + $0x78] sm:$0xff] %vm196_vm1, %v469_v38 }
  0xbe   : > { %485 = vst.msk [vmem:[#allocation2 + $0x70] sm:$0xff] %vm196_vm1, %v468_v39  ;;  %v365_v59 = vpop.xlane.xlu1 %364  ;;  %v562_v39 = vld [vmem:[#allocation2 + $0x40] sm:$0xff] }
  0xbf   : > { %v520_v60 = vadd.f32 %v488_v57, %v365_v59  ;;  %v361_v44 = vpop.xlane.xlu0 %360  ;;  %v1719_v12 = vmul.f32 0.0051020407, %v562_v39 }
  0xc0   : > { %v519_v46 = vadd.f32 %v487_v42, %v361_v44  ;;  %v498_v44 = vld [vmem:[#allocation3 + $0x58] sm:$0xff] }
  0xc1   : > { %536 = vst.msk [vmem:[#allocation3 + $0x8] sm:$0xff] %vm196_vm1, %v520_v60 }
  0xc2   : > { %535 = vst.msk [vmem:[#allocation3] sm:$0xff] %vm196_vm1, %v519_v46  ;;  %v373_v50 = vpop.xlane.xlu1 %372  ;;  %v1714_v46 = vmul.f32 0.0051020407, %v563_v28 }
  0xc3   : > { %v522_v7 = vadd.f32 %v490_v61, %v373_v50  ;;  %v369_v52 = vpop.xlane.xlu0 %368  ;;  %v565_v61 = vld [vmem:[#allocation2 + $0x58] sm:$0xff] }
  0xc4   : > { %v521_v8 = vadd.f32 %v489_v47, %v369_v52  ;;  %v564_v52 = vld [vmem:[#allocation2 + $0x50] sm:$0xff] }
  0xc5   : > { %538 = vst.msk [vmem:[#allocation3 + $0x18] sm:$0xff] %vm196_vm1, %v522_v7  ;;  %v624_v7 = vmul.f32 %v1698_v22, %v1698_v22 }
  0xc6   : > { %537 = vst.msk [vmem:[#allocation3 + $0x10] sm:$0xff] %vm196_vm1, %v521_v8  ;;  %v381_v58 = vpop.xlane.xlu1 %380 }
  0xc7   : > { %v524_v17 = vadd.f32 %v492_v54, %v381_v58  ;;  %v377_v63 = vpop.xlane.xlu0 %376 }
  0xc8   : > { %v587_v21 = vld [vmem:[#allocation3 + $0x8] sm:$0xff]  ;;  %v523_v6 = vadd.f32 %v491_v4, %v377_v63  ;;  %v497_v4 = vld [vmem:[#allocation3 + $0x50] sm:$0xff] }
  0xc9   : > { %v603_v27 = vmul.f32 0.0051020407, %v587_v21  ;;  %v586_v0 = vld [vmem:[#allocation3] sm:$0xff]  ;;  %540 = vst.msk [vmem:[#allocation3 + $0x28] sm:$0xff] %vm196_vm1, %v524_v17  ;;  %v1722_v17 = vmul.f32 0.0051020407, %v565_v61 }
  0xca   : > { %v602_v15 = vmul.f32 0.0051020407, %v586_v0  ;;  %539 = vst.msk [vmem:[#allocation3 + $0x20] sm:$0xff] %vm196_vm1, %v523_v6  ;;  %v389_v33 = vpop.xlane.xlu1 %388  ;;  %v1724_v6 = vmul.f32 0.0051020407, %v564_v52  ;;  %v500_v0 = vld [vmem:[#allocation3 + $0x68] sm:$0xff] }
  0xcb   : > { %v635_v35 = vsub.f32 %v603_v27, %v619_v25  ;;  %v526_v37 = vadd.f32 %v494_v10, %v389_v33  ;;  %v385_v20 = vpop.xlane.xlu0 %384 }
  0xcc   : > { %v634_v40 = vsub.f32 %v602_v15, %v618_v29  ;;  %v589_v23 = vld [vmem:[#allocation3 + $0x18] sm:$0xff]  ;;  %v525_v41 = vadd.f32 %v493_v24, %v385_v20  ;;  %v627_v29 = vmul.f32 %v1714_v46, %v1714_v46  ;;  %v567_v15 = vld [vmem:[#allocation2 + $0x68] sm:$0xff]  ;;  %v499_v20 = vld [vmem:[#allocation3 + $0x60] sm:$0xff] }
  0xcd   : > { %v651_v30 = vmax.f32 %v635_v35, 0.0  ;;  %v605_v48 = vmul.f32 0.0051020407, %v589_v23  ;;  %v588_v31 = vld [vmem:[#allocation3 + $0x10] sm:$0xff]  ;;  %542 = vst.msk [vmem:[#allocation3 + $0x38] sm:$0xff] %vm196_vm1, %v526_v37 }
  0xce   : > { %v650_v53 = vmax.f32 %v634_v40, 0.0  ;;  %v604_v36 = vmul.f32 0.0051020407, %v588_v31  ;;  %541 = vst.msk [vmem:[#allocation3 + $0x30] sm:$0xff] %vm196_vm1, %v525_v41  ;;  %v397_v38 = vpop.xlane.xlu1 %396  ;;  %v626_v40 = vmul.f32 %v1719_v12, %v1719_v12 }
  0xcf   : > { %v667_v57 = vadd.f32 0.001, %v651_v30  ;;  %v637_v42 = vsub.f32 %v605_v48, %v621_v45  ;;  %v528_v59 = vadd.f32 %v496_v26, %v397_v38  ;;  %v393_v60 = vpop.xlane.xlu0 %392  ;;  %v566_v45 = vld [vmem:[#allocation2 + $0x60] sm:$0xff] }
  0xd0   : > { %v666_v47 = vadd.f32 0.001, %v650_v53  ;;  %v636_v62 = vsub.f32 %v604_v36, %v620_v43  ;;  %v591_v50 = vld [vmem:[#allocation3 + $0x28] sm:$0xff]  ;;  %v527_v3 = vadd.f32 %v495_v49, %v393_v60  ;;  %v1734_v43 = vmul.f32 %v1722_v17, %v1722_v17  ;;  %v502_v49 = vld [vmem:[#allocation3 + $0x78] sm:$0xff] }
  0xd1   : > { %1242 = vrsqrt.f32 %v667_v57  ;;  %v653_v8 = vmax.f32 %v637_v42, 0.0  ;;  %v607_v54 = vmul.f32 0.0051020407, %v591_v50  ;;  %v590_v9 = vld [vmem:[#allocation3 + $0x20] sm:$0xff]  ;;  %544 = vst.msk [vmem:[#allocation3 + $0x48] sm:$0xff] %vm196_vm1, %v528_v59  ;;  %v628_v57 = vmul.f32 %v1724_v6, %v1724_v6  ;;  %v568_v42 = vld [vmem:[#allocation2 + $0x70] sm:$0xff] }
  0xd2   : > { %1244 = vrsqrt.f32 %v666_v47  ;;  %v652_v58 = vmax.f32 %v636_v62, 0.0  ;;  %v606_v13 = vmul.f32 0.0051020407, %v590_v9  ;;  %543 = vst.msk [vmem:[#allocation3 + $0x40] sm:$0xff] %vm196_vm1, %v527_v3  ;;  %v405_v16 = vpop.xlane.xlu1 %404  ;;  %v1742_v61 = vmul.f32 0.0051020407, %v566_v45 }
  0xd3   : > { %v669_v63 = vadd.f32 0.001, %v653_v8  ;;  %v639_v10 = vsub.f32 %v607_v54, %v623_v34  ;;  %v530_v19 = vadd.f32 %v498_v44, %v405_v16  ;;  %v401_v21 = vpop.xlane.xlu0 %400  ;;  %v1737_v34 = vmul.f32 0.0051020407, %v567_v15 }
  0xd4   : > { %v668_v24 = vadd.f32 0.001, %v652_v58  ;;  %v638_v25 = vsub.f32 %v606_v13, %v622_v51  ;;  %v593_v5 = vld [vmem:[#allocation3 + $0x38] sm:$0xff]  ;;  %v529_v27 = vadd.f32 %v497_v4, %v401_v21  ;;  %v1747_v9 = vmul.f32 0.0051020407, %v568_v42  ;;  %v699_v4 = vld [vmem:[%s2169_s1 + $0x8] sm:$0xff] }
  0xd5   : > { %1246 = vrsqrt.f32 %v669_v63  ;;  %v655_v33 = vmax.f32 %v639_v10, 0.0  ;;  %v609_v35 = vmul.f32 0.0051020407, %v593_v5  ;;  %v592_v37 = vld [vmem:[#allocation3 + $0x30] sm:$0xff]  ;;  %546 = vst.msk [vmem:[#allocation3 + $0x58] sm:$0xff] %vm196_vm1, %v530_v19  ;;  %v569_v51 = vld [vmem:[#allocation2 + $0x78] sm:$0xff]  ;;  %v631_v10 = vmul.f32 %v1737_v34, %v1737_v34 }
  0xd6   : > { %1248 = vrsqrt.f32 %v668_v24  ;;  %v654_v23 = vmax.f32 %v638_v25, 0.0  ;;  %v608_v41 = vmul.f32 0.0051020407, %v592_v37  ;;  %545 = vst.msk [vmem:[#allocation3 + $0x50] sm:$0xff] %vm196_vm1, %v529_v27  ;;  %v413_v26 = vpop.xlane.xlu1 %412  ;;  %v1745_v3 = vmul.f32 0.0051020407, %v569_v51 }
  0xd7   : > { %v671_v28 = vadd.f32 0.001, %v655_v33  ;;  %v641_v30 = vsub.f32 %v609_v35, %v1712_v56  ;;  %v532_v48 = vadd.f32 %v500_v0, %v413_v26  ;;  %v409_v31 = vpop.xlane.xlu0 %408  ;;  %v501_v56 = vld [vmem:[#allocation3 + $0x70] sm:$0xff]  ;;  %v698_v19 = vld [vmem:[%s2169_s1] sm:$0xff]  ;;  %v630_v27 = vmul.f32 %v1742_v61, %v1742_v61  ;;  %v701_v26 = vld [vmem:[%s2169_s1 + $0x18] sm:$0xff] }
  0xd8   : > { %v670_v53 = vadd.f32 0.001, %v654_v23  ;;  %v640_v36 = vsub.f32 %v608_v41, %v624_v7  ;;  %v595_v38 = vld [vmem:[#allocation3 + $0x48] sm:$0xff]  ;;  %v531_v39 = vadd.f32 %v499_v20, %v409_v31  ;;  %v1763_v33 = vmul.f32 %v1745_v3, %v1745_v3  ;;  %v700_v31 = vld [vmem:[%s2169_s1 + $0x10] sm:$0xff] }
  0xd9   : > { %1250 = vrsqrt.f32 %v671_v28  ;;  %v657_v59 = vmax.f32 %v641_v30, 0.0  ;;  %v611_v60 = vmul.f32 0.0051020407, %v595_v38  ;;  %v594_v44 = vld [vmem:[#allocation3 + $0x40] sm:$0xff]  ;;  %548 = vst.msk [vmem:[#allocation3 + $0x68] sm:$0xff] %vm196_vm1, %v532_v48  ;;  %v747_v23 = vld [vmem:[%s2170_s2 + $0x8] sm:$0xff] }
  0xda   : > { %1252 = vrsqrt.f32 %v670_v53  ;;  %v656_v47 = vmax.f32 %v640_v36, 0.0  ;;  %v610_v62 = vmul.f32 0.0051020407, %v594_v44  ;;  %547 = vst.msk [vmem:[#allocation3 + $0x60] sm:$0xff] %vm196_vm1, %v531_v39  ;;  %v421_v50 = vpop.xlane.xlu1 %420  ;;  %v746_v48 = vld [vmem:[%s2170_s2] sm:$0xff] }
  0xdb   : > { %v673_v7 = vadd.f32 0.001, %v657_v59  ;;  %v643_v52 = vsub.f32 %v611_v60, %v627_v29  ;;  %v534_v8 = vadd.f32 %v502_v49, %v421_v50  ;;  %v417_v54 = vpop.xlane.xlu0 %416  ;;  %v703_v50 = vld [vmem:[%s2169_s1 + $0x28] sm:$0xff] }
  0xdc   : > { %v672_v58 = vadd.f32 0.001, %v656_v47  ;;  %v642_v13 = vsub.f32 %v610_v62, %v626_v40  ;;  %v597_v16 = vld [vmem:[#allocation3 + $0x58] sm:$0xff]  ;;  %v533_v63 = vadd.f32 %v501_v56, %v417_v54  ;;  %v1768_v40 = vmul.f32 %v1747_v9, %v1747_v9  ;;  %v748_v54 = vld [vmem:[%s2170_s2 + $0x10] sm:$0xff] }
  0xdd   : > { %1254 = vrsqrt.f32 %v673_v7  ;;  %v659_v21 = vmax.f32 %v643_v52, 0.0  ;;  %v613_v24 = vmul.f32 0.0051020407, %v597_v16  ;;  %v596_v25 = vld [vmem:[#allocation3 + $0x50] sm:$0xff]  ;;  %550 = vst.msk [vmem:[#allocation3 + $0x78] sm:$0xff] %vm196_vm1, %v534_v8  ;;  %v749_v47 = vld [vmem:[%s2170_s2 + $0x18] sm:$0xff] }
  0xde   : > { %v1243_v5 = vpop.eup %1242  ;;  %1256 = vrsqrt.f32 %v672_v58  ;;  %v658_v0 = vmax.f32 %v642_v13, 0.0  ;;  %v612_v29 = vmul.f32 0.0051020407, %v596_v25  ;;  %549 = vst.msk [vmem:[#allocation3 + $0x70] sm:$0xff] %vm196_vm1, %v533_v63 }
  0xdf   : > { %v1245_v15 = vpop.eup %1244  ;;  %v715_v35 = vmul.f32 %v1243_v5, %v699_v4  ;;  %v675_v37 = vadd.f32 0.001, %v659_v21  ;;  %v645_v20 = vsub.f32 %v613_v24, %v1734_v43  ;;  %v702_v4 = vld [vmem:[%s2169_s1 + $0x20] sm:$0xff] }
  0xe0   : > { %v714_v41 = vmul.f32 %v1245_v15, %v698_v19  ;;  %v674_v45 = vadd.f32 0.001, %v658_v0  ;;  %v644_v28 = vsub.f32 %v612_v29, %v628_v57  ;;  %v599_v30 = vld [vmem:[#allocation3 + $0x68] sm:$0xff] }
  0xe1   : > { %731 = vst.msk [vmem:[#allocation4 + $0x8] sm:$0xff] %vm196_vm1, %v715_v35  ;;  %v763_v43 = vmul.f32 %v715_v35, %v1676_v55  ;;  %1258 = vrsqrt.f32 %v675_v37  ;;  %v661_v49 = vmax.f32 %v645_v20, 0.0  ;;  %v615_v51 = vmul.f32 0.0051020407, %v599_v30  ;;  %v598_v53 = vld [vmem:[#allocation3 + $0x60] sm:$0xff]  ;;  %v751_v29 = vld [vmem:[%s2170_s2 + $0x28] sm:$0xff] }
  0xe2   : > { %v1247_v36 = vpop.eup %1246  ;;  %730 = vst.msk [vmem:[#allocation4] sm:$0xff] %vm196_vm1, %v714_v41  ;;  %v762_v38 = vmul.f32 %v714_v41, %v1679_v11  ;;  %1260 = vrsqrt.f32 %v674_v45  ;;  %v660_v39 = vmax.f32 %v644_v28, 0.0  ;;  %v614_v55 = vmul.f32 0.0051020407, %v598_v53  ;;  %v705_v35 = vld [vmem:[%s2169_s1 + $0x38] sm:$0xff] }
  0xe3   : > { %v1249_v57 = vpop.eup %1248  ;;  %v779_v42 = vsub.f32 %v747_v23, %v763_v43  ;;  %v717_v59 = vmul.f32 %v1247_v36, %v701_v26  ;;  %v677_v60 = vadd.f32 0.001, %v661_v49  ;;  %v647_v44 = vsub.f32 %v615_v51, %v631_v10  ;;  %v704_v23 = vld [vmem:[%s2169_s1 + $0x30] sm:$0xff]  ;;  %v707_v51 = vld [vmem:[%s2169_s1 + $0x48] sm:$0xff] }
  0xe4   : > { %v778_v56 = vsub.f32 %v746_v48, %v762_v38  ;;  %v716_v62 = vmul.f32 %v1249_v57, %v700_v31  ;;  %v676_v7 = vadd.f32 0.001, %v660_v39  ;;  %v646_v11 = vsub.f32 %v614_v55, %v630_v27  ;;  %v601_v52 = vld [vmem:[#allocation3 + $0x78] sm:$0xff]  ;;  %v752_v36 = vld [vmem:[%s2170_s2 + $0x30] sm:$0xff]  ;;  %v706_v38 = vld [vmem:[%s2169_s1 + $0x40] sm:$0xff] }
  0xe5   : > { %795 = vst.msk [vmem:[#allocation5 + $0x8] sm:$0xff] %vm196_vm1, %v779_v42  ;;  %733 = vst.msk [vmem:[#allocation4 + $0x18] sm:$0xff] %vm196_vm1, %v717_v59  ;;  %v765_v8 = vmul.f32 %v717_v59, %v1684_v1  ;;  %1262 = vrsqrt.f32 %v677_v60  ;;  %v663_v58 = vmax.f32 %v647_v44, 0.0  ;;  %v617_v13 = vmul.f32 0.0051020407, %v601_v52  ;;  %v600_v16 = vld [vmem:[#allocation3 + $0x70] sm:$0xff] }
  0xe6   : > { %v1251_v63 = vpop.eup %1250  ;;  %794 = vst.msk [vmem:[#allocation5] sm:$0xff] %vm196_vm1, %v778_v56  ;;  %732 = vst.msk [vmem:[#allocation4 + $0x10] sm:$0xff] %vm196_vm1, %v716_v62  ;;  %v764_v10 = vmul.f32 %v716_v62, %v1682_v2  ;;  %1264 = vrsqrt.f32 %v676_v7  ;;  %v662_v1 = vmax.f32 %v646_v11, 0.0  ;;  %v616_v19 = vmul.f32 0.0051020407, %v600_v16  ;;  %v753_v31 = vld [vmem:[%s2170_s2 + $0x38] sm:$0xff] }
  0xe7   : > { %v1253_v21 = vpop.eup %1252  ;;  %v781_v24 = vsub.f32 %v749_v47, %v765_v8  ;;  %v719_v25 = vmul.f32 %v1251_v63, %v703_v50  ;;  %v679_v5 = vadd.f32 0.001, %v663_v58  ;;  %v649_v27 = vsub.f32 %v617_v13, %v1763_v33  ;;  %v750_v33 = vld [vmem:[%s2170_s2 + $0x20] sm:$0xff]  ;;  %v755_v60 = vld [vmem:[%s2170_s2 + $0x48] sm:$0xff]  ;;  %v709_v56 = vld [vmem:[%s2169_s1 + $0x58] sm:$0xff] }
  0xe8   : > { %v780_v0 = vsub.f32 %v748_v54, %v764_v10  ;;  %v718_v15 = vmul.f32 %v1253_v21, %v702_v4  ;;  %v678_v2 = vadd.f32 0.001, %v662_v1  ;;  %v648_v37 = vsub.f32 %v616_v19, %v1768_v40  ;;  %v754_v47 = vld [vmem:[%s2170_s2 + $0x40] sm:$0xff]  ;;  %v708_v62 = vld [vmem:[%s2169_s1 + $0x50] sm:$0xff]  ;;  %v711_v58 = vld [vmem:[%s2169_s1 + $0x68] sm:$0xff] }
  0xe9   : > { %797 = vst.msk [vmem:[#allocation5 + $0x18] sm:$0xff] %vm196_vm1, %v781_v24  ;;  %735 = vst.msk [vmem:[#allocation4 + $0x28] sm:$0xff] %vm196_vm1, %v719_v25  ;;  %v767_v20 = vmul.f32 %v719_v25, %v1691_v14  ;;  %1266 = vrsqrt.f32 %v679_v5  ;;  %v665_v41 = vmax.f32 %v649_v27, 0.0  ;;  %v710_v16 = vld [vmem:[%s2169_s1 + $0x60] sm:$0xff]  ;;  %v713_v5 = vld [vmem:[%s2169_s1 + $0x78] sm:$0xff] }
  0xea   : > { %v1255_v26 = vpop.eup %1254  ;;  %796 = vst.msk [vmem:[#allocation5 + $0x10] sm:$0xff] %vm196_vm1, %v780_v0  ;;  %734 = vst.msk [vmem:[#allocation4 + $0x20] sm:$0xff] %vm196_vm1, %v718_v15  ;;  %v766_v40 = vmul.f32 %v718_v15, %v1693_v32  ;;  %1268 = vrsqrt.f32 %v678_v2  ;;  %v664_v45 = vmax.f32 %v648_v37, 0.0  ;;  %v712_v0 = vld [vmem:[%s2169_s1 + $0x70] sm:$0xff] }
  0xeb   : > { %v1257_v14 = vpop.eup %1256  ;;  %v783_v28 = vsub.f32 %v751_v29, %v767_v20  ;;  %v721_v30 = vmul.f32 %v1255_v26, %v705_v35  ;;  %v681_v43 = vadd.f32 0.001, %v665_v41  ;;  %v760_v41 = vld [vmem:[%s2170_s2 + $0x70] sm:$0xff] }
  0xec   : > { %v782_v48 = vsub.f32 %v750_v33, %v766_v40  ;;  %v720_v49 = vmul.f32 %v1257_v14, %v704_v23  ;;  %v680_v53 = vadd.f32 0.001, %v664_v45 }
  0xed   : > { %799 = vst.msk [vmem:[#allocation5 + $0x28] sm:$0xff] %vm196_vm1, %v783_v28  ;;  %737 = vst.msk [vmem:[#allocation4 + $0x38] sm:$0xff] %vm196_vm1, %v721_v30  ;;  %v769_v32 = vmul.f32 %v721_v30, %v1696_v18  ;;  %1270 = vrsqrt.f32 %v681_v43 }
  0xee   : > { %v1259_v39 = vpop.eup %1258  ;;  %798 = vst.msk [vmem:[#allocation5 + $0x20] sm:$0xff] %vm196_vm1, %v782_v48  ;;  %736 = vst.msk [vmem:[#allocation4 + $0x30] sm:$0xff] %vm196_vm1, %v720_v49  ;;  %v768_v55 = vmul.f32 %v720_v49, %v1698_v22  ;;  %1272 = vrsqrt.f32 %v680_v53 }
  0xef   : > { %v1261_v57 = vpop.eup %1260  ;;  %v785_v42 = vsub.f32 %v753_v31, %v769_v32  ;;  %v723_v18 = vmul.f32 %v1259_v39, %v707_v51 }
  0xf0   : > { %v784_v59 = vsub.f32 %v752_v36, %v768_v55  ;;  %v722_v44 = vmul.f32 %v1261_v57, %v706_v38 }
  0xf1   : > { %801 = vst.msk [vmem:[#allocation5 + $0x38] sm:$0xff] %vm196_vm1, %v785_v42  ;;  %739 = vst.msk [vmem:[#allocation4 + $0x48] sm:$0xff] %vm196_vm1, %v723_v18  ;;  %v771_v22 = vmul.f32 %v723_v18, %v1714_v46  ;;  %v757_v46 = vld [vmem:[%s2170_s2 + $0x58] sm:$0xff] }
  0xf2   : > { %v1263_v50 = vpop.eup %1262  ;;  %800 = vst.msk [vmem:[#allocation5 + $0x30] sm:$0xff] %vm196_vm1, %v784_v59  ;;  %738 = vst.msk [vmem:[#allocation4 + $0x40] sm:$0xff] %vm196_vm1, %v722_v44  ;;  %v770_v7 = vmul.f32 %v722_v44, %v1719_v12  ;;  %v756_v12 = vld [vmem:[%s2170_s2 + $0x50] sm:$0xff] }
  0xf3   : > { %v1265_v11 = vpop.eup %1264  ;;  %v787_v52 = vsub.f32 %v755_v60, %v771_v22  ;;  %v725_v8 = vmul.f32 %v1263_v50, %v709_v56 }
  0xf4   : > { %v786_v54 = vsub.f32 %v754_v47, %v770_v7  ;;  %v724_v4 = vmul.f32 %v1265_v11, %v708_v62 }
  0xf5   : > { %803 = vst.msk [vmem:[#allocation5 + $0x48] sm:$0xff] %vm196_vm1, %v787_v52  ;;  %741 = vst.msk [vmem:[#allocation4 + $0x58] sm:$0xff] %vm196_vm1, %v725_v8  ;;  %v773_v13 = vmul.f32 %v725_v8, %v1722_v17  ;;  %v759_v17 = vld [vmem:[%s2170_s2 + $0x68] sm:$0xff] }
  0xf6   : > { %v1267_v63 = vpop.eup %1266  ;;  %802 = vst.msk [vmem:[#allocation5 + $0x40] sm:$0xff] %vm196_vm1, %v786_v54  ;;  %740 = vst.msk [vmem:[#allocation4 + $0x50] sm:$0xff] %vm196_vm1, %v724_v4  ;;  %v772_v10 = vmul.f32 %v724_v4, %v1724_v6  ;;  %v758_v6 = vld [vmem:[%s2170_s2 + $0x60] sm:$0xff] }
  0xf7   : > { %v1269_v1 = vpop.eup %1268  ;;  %v789_v19 = vsub.f32 %v757_v46, %v773_v13  ;;  %v727_v21 = vmul.f32 %v1267_v63, %v711_v58 }
  0xf8   : > { %v788_v24 = vsub.f32 %v756_v12, %v772_v10  ;;  %v726_v25 = vmul.f32 %v1269_v1, %v710_v16 }
  0xf9   : > { %805 = vst.msk [vmem:[#allocation5 + $0x58] sm:$0xff] %vm196_vm1, %v789_v19  ;;  %743 = vst.msk [vmem:[#allocation4 + $0x68] sm:$0xff] %vm196_vm1, %v727_v21  ;;  %v775_v27 = vmul.f32 %v727_v21, %v1737_v34  ;;  %v761_v34 = vld [vmem:[%s2170_s2 + $0x78] sm:$0xff] }
  0xfa   : > { %v1271_v29 = vpop.eup %1270  ;;  %804 = vst.msk [vmem:[#allocation5 + $0x50] sm:$0xff] %vm196_vm1, %v788_v24  ;;  %742 = vst.msk [vmem:[#allocation4 + $0x60] sm:$0xff] %vm196_vm1, %v726_v25  ;;  %v774_v15 = vmul.f32 %v726_v25, %v1742_v61 }
  0xfb   : > { %v1273_v35 = vpop.eup %1272  ;;  %v791_v2 = vsub.f32 %v759_v17, %v775_v27  ;;  %v729_v37 = vmul.f32 %v1271_v29, %v713_v5 }
  0xfc   : > { %v790_v20 = vsub.f32 %v758_v6, %v774_v15  ;;  %v728_v33 = vmul.f32 %v1273_v35, %v712_v0 }
  0xfd   : > { %807 = vst.msk [vmem:[#allocation5 + $0x68] sm:$0xff] %vm196_vm1, %v791_v2  ;;  %745 = vst.msk [vmem:[#allocation4 + $0x78] sm:$0xff] %vm196_vm1, %v729_v37  ;;  %v777_v23 = vmul.f32 %v729_v37, %v1745_v3 }
  0xfe   : > { %806 = vst.msk [vmem:[#allocation5 + $0x60] sm:$0xff] %vm196_vm1, %v790_v20  ;;  %744 = vst.msk [vmem:[#allocation4 + $0x70] sm:$0xff] %vm196_vm1, %v728_v33  ;;  %v776_v61 = vmul.f32 %v728_v33, %v1747_v9 }
  0xff   : > { %v793_v26 = vsub.f32 %v761_v34, %v777_v23 }
 0x100   : > { %v792_v40 = vsub.f32 %v760_v41, %v776_v61 }
 0x101   : > { %809 = vst.msk [vmem:[#allocation5 + $0x78] sm:$0xff] %vm196_vm1, %v793_v26 }
 0x102   : > { %808 = vst.msk [vmem:[#allocation5 + $0x70] sm:$0xff] %vm196_vm1, %v792_v40 }
 0x103 PF: > { %p1211_p5 = scmp.ne.s32.totalorder %s1290_s12, 1 }
 0x105   : > { %813 = sbr.rel (%p1211_p5) target bundleno = 456 (0x1c8), region = 48 }
 0x10a   : > { %v848_v3 = vld [vmem:[#allocation4 + $0x10] sm:$0xff]  ;;  %v846_v45 = vld [vmem:[#allocation4] sm:$0xff]  ;;  %v1301_v14 = vmov 0   ;;  %v849_v28 = vld [vmem:[#allocation4 + $0x18] sm:$0xff]  ;;  %vm1103_vm2 = vcmask 556032  }
 0x10b   : > { %1275 = vset.pattern.permute.xlu1 %v1301_v14  ;;  %1274 = vset.pattern.permute.xlu0 %v1301_v14  ;;  %v847_v30 = vld [vmem:[#allocation4 + $0x8] sm:$0xff]  ;;  %v850_v43 = vld [vmem:[#allocation4 + $0x20] sm:$0xff]  ;;  %v853_v48 = vld [vmem:[#allocation4 + $0x38] sm:$0xff] }
 0x10c   : > { %874 = vperm.xlu1 %1275, %v848_v3   ;;  %864 = vperm.xlu0 %1274, %v846_v45   ;;  %v851_v9 = vld [vmem:[#allocation4 + $0x28] sm:$0xff]  ;;  %v852_v31 = vld [vmem:[#allocation4 + $0x30] sm:$0xff]  ;;  %v854_v51 = vld [vmem:[#allocation4 + $0x40] sm:$0xff] }
 0x10d   : > { %v855_v49 = vld [vmem:[#allocation4 + $0x48] sm:$0xff]  ;;  %v857_v53 = vld [vmem:[#allocation4 + $0x58] sm:$0xff]  ;;  %v856_v32 = vld [vmem:[#allocation4 + $0x50] sm:$0xff] }
 0x10e   : > { %v859_v36 = vld [vmem:[#allocation4 + $0x68] sm:$0xff]  ;;  %v858_v38 = vld [vmem:[#allocation4 + $0x60] sm:$0xff]  ;;  %v861_v39 = vld [vmem:[#allocation4 + $0x78] sm:$0xff] }
 0x10f   : > { %v860_v55 = vld [vmem:[#allocation4 + $0x70] sm:$0xff]  ;;  %v975_v57 = vld [vmem:[#allocation5 + $0x8] sm:$0xff]  ;;  %v974_v42 = vld [vmem:[#allocation5] sm:$0xff] }
 0x110   : > { %879 = vperm.xlu1 %1275, %v849_v28   ;;  %869 = vperm.xlu0 %1274, %v847_v30   ;;  %v977_v18 = vld [vmem:[#allocation5 + $0x18] sm:$0xff]  ;;  %v976_v59 = vld [vmem:[#allocation5 + $0x10] sm:$0xff]  ;;  %v979_v60 = vld [vmem:[#allocation5 + $0x28] sm:$0xff] }
 0x111   : > { %v978_v44 = vld [vmem:[#allocation5 + $0x20] sm:$0xff]  ;;  %v981_v56 = vld [vmem:[#allocation5 + $0x38] sm:$0xff]  ;;  %v980_v22 = vld [vmem:[#allocation5 + $0x30] sm:$0xff] }
 0x112   : > { %v983_v47 = vld [vmem:[#allocation5 + $0x48] sm:$0xff]  ;;  %v982_v62 = vld [vmem:[#allocation5 + $0x40] sm:$0xff]  ;;  %v985_v50 = vld [vmem:[#allocation5 + $0x58] sm:$0xff] }
 0x113   : > { %v984_v7 = vld [vmem:[#allocation5 + $0x50] sm:$0xff]  ;;  %v987_v11 = vld [vmem:[#allocation5 + $0x68] sm:$0xff]  ;;  %v986_v52 = vld [vmem:[#allocation5 + $0x60] sm:$0xff] }
 0x114   : > { %889 = vperm.xlu1 %1275, %v851_v9   ;;  %884 = vperm.xlu0 %1274, %v850_v43   ;;  %v989_v8 = vld [vmem:[#allocation5 + $0x78] sm:$0xff]  ;;  %v988_v54 = vld [vmem:[#allocation5 + $0x70] sm:$0xff]  ;;  %v814_v5 = vld [vmem:[%s2168_s0] sm:$0xff] }
 0x115   : > { %v815_v27 = vld [vmem:[%s2168_s0 + $0x8] sm:$0xff]  ;;  %v816_v6 = vld [vmem:[%s2168_s0 + $0x10] sm:$0xff]  ;;  %v817_v0 = vld [vmem:[%s2168_s0 + $0x18] sm:$0xff] }
 0x116   : > { %v818_v35 = vld [vmem:[%s2168_s0 + $0x20] sm:$0xff]  ;;  %v819_v33 = vld [vmem:[%s2168_s0 + $0x28] sm:$0xff]  ;;  %v820_v23 = vld [vmem:[%s2168_s0 + $0x30] sm:$0xff] }
 0x117   : > { %v821_v41 = vld [vmem:[%s2168_s0 + $0x38] sm:$0xff] }
 0x118   : > { %899 = vperm.xlu1 %1275, %v853_v48   ;;  %894 = vperm.xlu0 %1274, %v852_v31   ;;  %v824_v48 = vld [vmem:[%s2168_s0 + $0x50] sm:$0xff]  ;;  %v825_v31 = vld [vmem:[%s2168_s0 + $0x58] sm:$0xff] }
 0x11c   : > { %909 = vperm.xlu1 %1275, %v855_v49   ;;  %904 = vperm.xlu0 %1274, %v854_v51   ;;  %v822_v49 = vld [vmem:[%s2168_s0 + $0x40] sm:$0xff]  ;;  %v823_v51 = vld [vmem:[%s2168_s0 + $0x48] sm:$0xff] }
 0x120   : > { %919 = vperm.xlu1 %1275, %v857_v53   ;;  %914 = vperm.xlu0 %1274, %v856_v32  }
 0x124   : > { %929 = vperm.xlu1 %1275, %v859_v36   ;;  %924 = vperm.xlu0 %1274, %v858_v38  }
 0x128   : > { %939 = vperm.xlu1 %1275, %v861_v39   ;;  %934 = vperm.xlu0 %1274, %v860_v55  }
 0x12c   : > { %997 = vperm.xlu1 %1275, %v975_v57   ;;  %992 = vperm.xlu0 %1274, %v974_v42  }
 0x130   : > { %1007 = vperm.xlu1 %1275, %v977_v18   ;;  %1002 = vperm.xlu0 %1274, %v976_v59  }
 0x134   : > { %1017 = vperm.xlu1 %1275, %v979_v60   ;;  %1012 = vperm.xlu0 %1274, %v978_v44   ;;  %v828_v60 = vld [vmem:[%s2168_s0 + $0x70] sm:$0xff]  ;;  %v829_v44 = vld [vmem:[%s2168_s0 + $0x78] sm:$0xff] }
 0x138   : > { %1027 = vperm.xlu1 %1275, %v981_v56   ;;  %1022 = vperm.xlu0 %1274, %v980_v22   ;;  %v826_v56 = vld [vmem:[%s2168_s0 + $0x60] sm:$0xff]  ;;  %v827_v22 = vld [vmem:[%s2168_s0 + $0x68] sm:$0xff] }
 0x13c   : > { %1037 = vperm.xlu1 %1275, %v983_v47   ;;  %1032 = vperm.xlu0 %1274, %v982_v62  }
 0x140   : > { %1047 = vperm.xlu1 %1275, %v985_v50   ;;  %1042 = vperm.xlu0 %1274, %v984_v7  }
 0x144   : > { %1057 = vperm.xlu1 %1275, %v987_v11   ;;  %1052 = vperm.xlu0 %1274, %v986_v52  }
 0x148   : > { %1067 = vperm.xlu1 %1275, %v989_v8   ;;  %1062 = vperm.xlu0 %1274, %v988_v54  }
 0x187   : > { %v875_v46 = vpop.permute.xlu1 %874  ;;  %v865_v4 = vpop.permute.xlu0 %864 }
 0x188   : > { %v942_v2 = vmul.f32 %v865_v4, %v814_v5  ;;  %v943_v37 = vmul.f32 %v865_v4, %v815_v27  ;;  %v946_v28 = vmul.f32 %v875_v46, %v818_v35  ;;  %v947_v30 = vmul.f32 %v875_v46, %v819_v33  ;;  %v835_v33 = vld [vmem:[%s2168_s0 + $0xa8] sm:$0xff] }
 0x18b   : > { %v880_v58 = vpop.permute.xlu1 %879  ;;  %v870_v13 = vpop.permute.xlu0 %869 }
 0x18c   : > { %v944_v20 = vmul.f32 %v870_v13, %v816_v6  ;;  %v945_v34 = vmul.f32 %v870_v13, %v817_v0  ;;  %v948_v9 = vmul.f32 %v880_v58, %v820_v23  ;;  %v949_v43 = vmul.f32 %v880_v58, %v821_v41  ;;  %v832_v58 = vld [vmem:[%s2168_s0 + $0x90] sm:$0xff]  ;;  %v833_v13 = vld [vmem:[%s2168_s0 + $0x98] sm:$0xff] }
 0x18f   : > { %v890_v12 = vpop.permute.xlu1 %889  ;;  %v885_v16 = vpop.permute.xlu0 %884 }
 0x190   : > { %v952_v57 = vmul.f32 %v890_v12, %v824_v48  ;;  %v953_v42 = vmul.f32 %v890_v12, %v825_v31  ;;  %v950_v18 = vmul.f32 %v885_v16, %v822_v49  ;;  %v951_v59 = vmul.f32 %v885_v16, %v823_v51  ;;  %v830_v12 = vld [vmem:[%s2168_s0 + $0x80] sm:$0xff]  ;;  %v831_v16 = vld [vmem:[%s2168_s0 + $0x88] sm:$0xff] }
 0x193   : > { %v1911_v63 = vpop.permute.xlu1 %899  ;;  %v1913_v10 = vpop.permute.xlu0 %894 }
 0x194   : > { %v956_v8 = vmul.f32 %v1911_v63, %v828_v60  ;;  %v957_v54 = vmul.f32 %v1911_v63, %v829_v44  ;;  %v954_v46 = vmul.f32 %v1913_v10, %v826_v56  ;;  %v955_v4 = vmul.f32 %v1913_v10, %v827_v22 }
 0x197   : > { %v1915_v1 = vpop.permute.xlu1 %909  ;;  %v1917_v19 = vpop.permute.xlu0 %904 }
 0x198   : > { %v960_v35 = vmul.f32 %v1915_v1, %v832_v58 }
 0x19b   : > { %v1919_v21 = vpop.permute.xlu1 %919  ;;  %v1921_v24 = vpop.permute.xlu0 %914 }
 0x19f   : > { %v1923_v17 = vpop.permute.xlu1 %929  ;;  %v1925_v25 = vpop.permute.xlu0 %924 }
 0x1a3   : > { %v1939_v29 = vpop.permute.xlu1 %939  ;;  %v1941_v15 = vpop.permute.xlu0 %934 }
 0x1a7   : > { %v998_v61 = vpop.permute.xlu1 %997  ;;  %v993_v26 = vpop.permute.xlu0 %992 }
 0x1a8   : > { %v1072_v40 = vadd.f32 %v998_v61, %v944_v20  ;;  %v1073_v3 = vadd.f32 %v998_v61, %v945_v34  ;;  %v1070_v45 = vadd.f32 %v993_v26, %v942_v2  ;;  %v1071_v14 = vadd.f32 %v993_v26, %v943_v37  ;;  %v836_v34 = vld [vmem:[%s2168_s0 + $0xb0] sm:$0xff] }
 0x1a9   : > { %v961_v2 = vmul.f32 %v1915_v1, %v833_v13  ;;  %v958_v37 = vmul.f32 %v1917_v19, %v830_v12  ;;  %v959_v20 = vmul.f32 %v1917_v19, %v831_v16  ;;  %v837_v1 = vld [vmem:[%s2168_s0 + $0xb8] sm:$0xff]  ;;  %v834_v19 = vld [vmem:[%s2168_s0 + $0xa0] sm:$0xff] }
 0x1aa   : > { %1105 = vst [vmem:[%s2171_s3 + $0x10] sm:$0xff] %v1072_v40  ;;  %1106 = vst.msk [vmem:[%s2171_s3 + $0x18] sm:$0xff] %vm1103_vm2, %v1073_v3 }
 0x1ab   : > { %1102 = vst [vmem:[%s2171_s3] sm:$0xff] %v1070_v45  ;;  %1104 = vst.msk [vmem:[%s2171_s3 + $0x8] sm:$0xff] %vm1103_vm2, %v1071_v14  ;;  %v1008_v53 = vpop.permute.xlu1 %1007  ;;  %v1003_v32 = vpop.permute.xlu0 %1002  ;;  %v964_v45 = vmul.f32 %v1919_v21, %v836_v34  ;;  %v965_v14 = vmul.f32 %v1919_v21, %v837_v1  ;;  %v841_v21 = vld [vmem:[%s2168_s0 + $0xd8] sm:$0xff] }
 0x1ac   : > { %v1076_v36 = vadd.f32 %v1008_v53, %v948_v9  ;;  %v1077_v38 = vadd.f32 %v1008_v53, %v949_v43  ;;  %v1074_v39 = vadd.f32 %v1003_v32, %v946_v28  ;;  %v1075_v55 = vadd.f32 %v1003_v32, %v947_v30  ;;  %v840_v9 = vld [vmem:[%s2168_s0 + $0xd0] sm:$0xff]  ;;  %v839_v43 = vld [vmem:[%s2168_s0 + $0xc8] sm:$0xff] }
 0x1ad   : > { %v962_v28 = vmul.f32 %v1921_v24, %v834_v19  ;;  %v963_v30 = vmul.f32 %v1921_v24, %v835_v33  ;;  %v838_v24 = vld [vmem:[%s2168_s0 + $0xc0] sm:$0xff] }
 0x1ae   : > { %1109 = vst [vmem:[%s2171_s3 + $0x30] sm:$0xff] %v1076_v36  ;;  %1110 = vst.msk [vmem:[%s2171_s3 + $0x38] sm:$0xff] %vm1103_vm2, %v1077_v38  ;;  %v968_v36 = vmul.f32 %v1923_v17, %v840_v9  ;;  %v969_v38 = vmul.f32 %v1923_v17, %v841_v21  ;;  %v845_v17 = vld [vmem:[%s2168_s0 + $0xf8] sm:$0xff] }
 0x1af   : > { %1107 = vst [vmem:[%s2171_s3 + $0x20] sm:$0xff] %v1074_v39  ;;  %1108 = vst.msk [vmem:[%s2171_s3 + $0x28] sm:$0xff] %vm1103_vm2, %v1075_v55  ;;  %v1018_v47 = vpop.permute.xlu1 %1017  ;;  %v1013_v62 = vpop.permute.xlu0 %1012  ;;  %v966_v39 = vmul.f32 %v1925_v25, %v838_v24  ;;  %v967_v55 = vmul.f32 %v1925_v25, %v839_v43  ;;  %v842_v25 = vld [vmem:[%s2168_s0 + $0xe0] sm:$0xff] }
 0x1b0   : > { %v1080_v50 = vadd.f32 %v1018_v47, %v952_v57  ;;  %v1081_v7 = vadd.f32 %v1018_v47, %v953_v42  ;;  %v1078_v11 = vadd.f32 %v1013_v62, %v950_v18  ;;  %v1079_v52 = vadd.f32 %v1013_v62, %v951_v59  ;;  %v844_v57 = vld [vmem:[%s2168_s0 + $0xf0] sm:$0xff]  ;;  %v843_v42 = vld [vmem:[%s2168_s0 + $0xe8] sm:$0xff] }
 0x1b1   : > { %v972_v47 = vmul.f32 %v1939_v29, %v844_v57  ;;  %v973_v62 = vmul.f32 %v1939_v29, %v845_v17 }
 0x1b2   : > { %1113 = vst [vmem:[%s2171_s3 + $0x50] sm:$0xff] %v1080_v50  ;;  %1114 = vst.msk [vmem:[%s2171_s3 + $0x58] sm:$0xff] %vm1103_vm2, %v1081_v7  ;;  %v970_v50 = vmul.f32 %v1941_v15, %v842_v25  ;;  %v971_v7 = vmul.f32 %v1941_v15, %v843_v42 }
 0x1b3   : > { %1111 = vst [vmem:[%s2171_s3 + $0x40] sm:$0xff] %v1078_v11  ;;  %1112 = vst.msk [vmem:[%s2171_s3 + $0x48] sm:$0xff] %vm1103_vm2, %v1079_v52  ;;  %v1028_v63 = vpop.permute.xlu1 %1027  ;;  %v1023_v10 = vpop.permute.xlu0 %1022 }
 0x1b4   : > { %v1084_v5 = vadd.f32 %v1028_v63, %v956_v8  ;;  %v1085_v27 = vadd.f32 %v1028_v63, %v957_v54  ;;  %v1082_v6 = vadd.f32 %v1023_v10, %v954_v46  ;;  %v1083_v0 = vadd.f32 %v1023_v10, %v955_v4 }
 0x1b6   : > { %1117 = vst [vmem:[%s2171_s3 + $0x70] sm:$0xff] %v1084_v5  ;;  %1118 = vst.msk [vmem:[%s2171_s3 + $0x78] sm:$0xff] %vm1103_vm2, %v1085_v27 }
 0x1b7   : > { %1115 = vst [vmem:[%s2171_s3 + $0x60] sm:$0xff] %v1082_v6  ;;  %1116 = vst.msk [vmem:[%s2171_s3 + $0x68] sm:$0xff] %vm1103_vm2, %v1083_v0  ;;  %v1038_v23 = vpop.permute.xlu1 %1037  ;;  %v1033_v41 = vpop.permute.xlu0 %1032 }
 0x1b8   : > { %v1088_v61 = vadd.f32 %v1038_v23, %v960_v35  ;;  %v1089_v26 = vadd.f32 %v1038_v23, %v961_v2  ;;  %v1086_v40 = vadd.f32 %v1033_v41, %v958_v37  ;;  %v1087_v3 = vadd.f32 %v1033_v41, %v959_v20 }
 0x1ba   : > { %1121 = vst [vmem:[%s2171_s3 + $0x90] sm:$0xff] %v1088_v61  ;;  %1122 = vst.msk [vmem:[%s2171_s3 + $0x98] sm:$0xff] %vm1103_vm2, %v1089_v26 }
 0x1bb   : > { %1119 = vst [vmem:[%s2171_s3 + $0x80] sm:$0xff] %v1086_v40  ;;  %1120 = vst.msk [vmem:[%s2171_s3 + $0x88] sm:$0xff] %vm1103_vm2, %v1087_v3  ;;  %v1048_v48 = vpop.permute.xlu1 %1047  ;;  %v1043_v31 = vpop.permute.xlu0 %1042 }
 0x1bc   : > { %v1092_v49 = vadd.f32 %v1048_v48, %v964_v45  ;;  %v1093_v51 = vadd.f32 %v1048_v48, %v965_v14  ;;  %v1090_v53 = vadd.f32 %v1043_v31, %v962_v28  ;;  %v1091_v32 = vadd.f32 %v1043_v31, %v963_v30 }
 0x1be   : > { %1125 = vst [vmem:[%s2171_s3 + $0xb0] sm:$0xff] %v1092_v49  ;;  %1126 = vst.msk [vmem:[%s2171_s3 + $0xb8] sm:$0xff] %vm1103_vm2, %v1093_v51 }
 0x1bf   : > { %1123 = vst [vmem:[%s2171_s3 + $0xa0] sm:$0xff] %v1090_v53  ;;  %1124 = vst.msk [vmem:[%s2171_s3 + $0xa8] sm:$0xff] %vm1103_vm2, %v1091_v32  ;;  %v1058_v18 = vpop.permute.xlu1 %1057  ;;  %v1053_v59 = vpop.permute.xlu0 %1052 }
 0x1c0   : > { %v1096_v60 = vadd.f32 %v1058_v18, %v968_v36  ;;  %v1097_v44 = vadd.f32 %v1058_v18, %v969_v38  ;;  %v1094_v56 = vadd.f32 %v1053_v59, %v966_v39  ;;  %v1095_v22 = vadd.f32 %v1053_v59, %v967_v55 }
 0x1c2   : > { %1129 = vst [vmem:[%s2171_s3 + $0xd0] sm:$0xff] %v1096_v60  ;;  %1130 = vst.msk [vmem:[%s2171_s3 + $0xd8] sm:$0xff] %vm1103_vm2, %v1097_v44 }
 0x1c3   : > { %1127 = vst [vmem:[%s2171_s3 + $0xc0] sm:$0xff] %v1094_v56  ;;  %1128 = vst.msk [vmem:[%s2171_s3 + $0xc8] sm:$0xff] %vm1103_vm2, %v1095_v22  ;;  %v1068_v29 = vpop.permute.xlu1 %1067  ;;  %v1063_v15 = vpop.permute.xlu0 %1062 }
 0x1c4   : > { %v1100_v11 = vadd.f32 %v1068_v29, %v972_v47  ;;  %v1101_v52 = vadd.f32 %v1068_v29, %v973_v62  ;;  %v1098_v8 = vadd.f32 %v1063_v15, %v970_v50  ;;  %v1099_v54 = vadd.f32 %v1063_v15, %v971_v7 }
 0x1c6   : > { %1133 = vst [vmem:[%s2171_s3 + $0xf0] sm:$0xff] %v1100_v11  ;;  %1134 = vst.msk [vmem:[%s2171_s3 + $0xf8] sm:$0xff] %vm1103_vm2, %v1101_v52 }
 0x1c7   : > { %1131 = vst [vmem:[%s2171_s3 + $0xe0] sm:$0xff] %v1098_v8  ;;  %1132 = vst.msk [vmem:[%s2171_s3 + $0xe8] sm:$0xff] %vm1103_vm2, %v1099_v54 }
 0x1c8 PF: > { %s13_s14 = sadd.s32 1, %s1298_s14   ;;  %s2172_s12 = smov %s1294_s13 }
 0x1c9   : > { %p10_p6 = scmp.ge.s32.totalorder %s13_s14, 4   ;;  %s2173_s13 = smov %s2175_s15 }
 0x1cb   :  { %12 = sbr.rel (!%p10_p6) target bundleno = 2 (0x2), region = 78 }

</bundles_post_ra>
